<compile_context>
chip_gen: v5e
topology: v5e:2x2
jax: 0.10.0
libtpu: 0.0.40
codegen_flags: <defaults>
</compile_context>

<pallas_src>
import functools

import jax
import jax.numpy as jnp
from jax.experimental import pallas as pl
from jax.experimental.pallas import tpu as pltpu

LANE = 128     # MXU / vreg lane width
SUBLANE = 8    # f32 sublane height


def _round_up(n, m):
    return (n + m - 1) // m * m


def mlp_kernel(x_ref, w1_ref, b1_ref, w2_ref, b2_ref,
               w3_ref, b3_ref, w4_ref, b4_ref, o_ref):
    # x/weights arrive in bf16; every dot accumulates in f32 on the MXU.
    # Biases are f32 (1, out) and broadcast over the batch tile on the VPU.
    h = jnp.dot(x_ref[...], w1_ref[...],
                preferred_element_type=jnp.float32) + b1_ref[...]
    h = jnp.maximum(h, 0.0).astype(jnp.bfloat16)

    h = jnp.dot(h, w2_ref[...],
                preferred_element_type=jnp.float32) + b2_ref[...]
    h = jnp.maximum(h, 0.0).astype(jnp.bfloat16)

    h = jnp.dot(h, w3_ref[...],
                preferred_element_type=jnp.float32) + b3_ref[...]
    h = jnp.maximum(h, 0.0).astype(jnp.bfloat16)

    h = jnp.dot(h, w4_ref[...],
                preferred_element_type=jnp.float32) + b4_ref[...]

    # Lane-dense (TB, 128) store — no masked vst.
    o_ref[...] = h.astype(o_ref.dtype)


@functools.partial(jax.jit, static_argnames=("block_batch",))
def mlp_forward(x, params, *, block_batch=256):
    (w1, b1), (w2, b2), (w3, b3), (w4, b4) = params
    batch, in_dim = x.shape
    out_dim = w4.shape[1]

    # --- lane-pad the final layer to a full 128-wide output slab -------------
    out_pad = _round_up(out_dim, LANE)
    if out_pad != out_dim:
        w4 = jnp.pad(w4, ((0, 0), (0, out_pad - out_dim)))
        b4 = jnp.pad(b4, ((0, 0), (0, out_pad - out_dim)))

    # --- batch tile: multiple of 8 sublanes, capped at block_batch ------------
    tb = min(block_batch, _round_up(batch, SUBLANE))
    batch_pad = _round_up(batch, tb)
    if batch_pad != batch:
        x = jnp.pad(x, ((0, batch_pad - batch), (0, 0)))

    # --- bf16 feed for the MXU; biases stay f32 -------------------------------
    x_bf = x.astype(jnp.bfloat16)
    w1, w2, w3, w4 = (w.astype(jnp.bfloat16) for w in (w1, w2, w3, w4))

    grid = (batch_pad // tb,)

    # Weights/biases: constant block index across the grid -> loaded once,
    # kept resident in VMEM while activation tiles stream through the pipeline.
    def const(a):
        return pl.BlockSpec(a.shape, lambda i: (0,) * a.ndim)

    out = pl.pallas_call(
        mlp_kernel,
        out_shape=jax.ShapeDtypeStruct((batch_pad, out_pad), jnp.float32),
        grid=grid,
        in_specs=[
            pl.BlockSpec((tb, in_dim), lambda i: (i, 0)),   # x tile
            const(w1), const(b1),
            const(w2), const(b2),
            const(w3), const(b3),
            const(w4), const(b4),
        ],
        out_specs=pl.BlockSpec((tb, out_pad), lambda i: (i, 0)),
        compiler_params=pltpu.CompilerParams(
            dimension_semantics=("parallel",)),   # shards tiles across TCs on v7x
    )(x_bf, w1, b1, w2, b2, w3, b3, w4, b4)

    # Strip batch padding and the lane padding of the last layer.
    return out[:batch, :out_dim]


def init_params(key, input_dim, output_dim):
    """Deterministic init matching the torch module's layer shapes.

    Torch Linear(in, out) has weight (out, in); we store (in, out) and a
    (1, out) bias so the kernel can do x @ W + b directly.
    """
    dims = [(input_dim, 64), (64, 128), (128, 64), (64, output_dim)]
    params = []
    for i, (din, dout) in enumerate(dims):
        kw, kb = jax.random.split(jax.random.fold_in(key, i))
        bound = 1.0 / jnp.sqrt(din)  # torch default U(-1/sqrt(in), 1/sqrt(in))
        w = jax.random.uniform(kw, (din, dout), jnp.float32, -bound, bound)
        b = jax.random.uniform(kb, (1, dout), jnp.float32, -bound, bound)
        params.append((w, b))
    return params


def reference_forward_bf16(x, params):
    """Plain-JAX reference with the same bf16-feed / f32-accumulate recipe."""
    h = x.astype(jnp.bfloat16)
    for i, (w, b) in enumerate(params):
        h = jnp.dot(h, w.astype(jnp.bfloat16),
                    preferred_element_type=jnp.float32) + b
        if i < len(params) - 1:
            h = jnp.maximum(h, 0.0).astype(jnp.bfloat16)
    return h


def reference_forward_f32(x, params):
    h = x
    for i, (w, b) in enumerate(params):
        h = h @ w + b
        if i < len(params) - 1:
            h = jnp.maximum(h, 0.0)
    return h


if __name__ == "__main__":
    # sklearn digits: 8x8 images flattened -> input_dim=64, 10 classes.
    # batch=300 (not a multiple of the tile) exercises batch padding and a
    # multi-tile pipelined grid; block_batch=128 gives grid=(3,).
    batch, input_dim, output_dim = 300, 64, 10

    key = jax.random.PRNGKey(0)
    kx, kp = jax.random.split(key)
    x = jax.random.normal(kx, (batch, input_dim), jnp.float32)
    params = init_params(kp, input_dim, output_dim)

    out = mlp_forward(x, params, block_batch=128)
    out = jax.block_until_ready(out)

    assert out.shape == (batch, output_dim)

    # Exact-recipe check (same bf16 casts, f32 accumulation).
    ref_bf16 = reference_forward_bf16(x, params)
    assert jnp.allclose(out, ref_bf16, atol=1e-4, rtol=1e-4), \
        "mismatch vs bf16-recipe JAX reference"

    # Loose sanity check against full-f32 math (bf16 inputs => ~1e-2 relative).
    ref_f32 = reference_forward_f32(x, params)
    assert jnp.allclose(out, ref_f32, atol=3e-2, rtol=3e-2), \
        "mismatch vs f32 JAX reference"

    print("KERNEL_OK")
</pallas_src>

<mosaic_0001>
module attributes {stable_mosaic.version = 11 : i64} {
  func.func @mlp_kernel(%arg0: i32, %arg1: memref<128x64xbf16, #tpu.memory_space<vmem>>, %arg2: memref<64x64xbf16, #tpu.memory_space<vmem>>, %arg3: memref<1x64xf32, #tpu.memory_space<vmem>>, %arg4: memref<64x128xbf16, #tpu.memory_space<vmem>>, %arg5: memref<1x128xf32, #tpu.memory_space<vmem>>, %arg6: memref<128x64xbf16, #tpu.memory_space<vmem>>, %arg7: memref<1x64xf32, #tpu.memory_space<vmem>>, %arg8: memref<64x128xbf16, #tpu.memory_space<vmem>>, %arg9: memref<1x128xf32, #tpu.memory_space<vmem>>, %arg10: memref<128x128xf32, #tpu.memory_space<vmem>>) attributes {dimension_semantics = [#tpu.dimension_semantics<parallel>], iteration_bounds = array<i64: 3>, scalar_prefetch = 0 : i64, scratch_operands = 0 : i64, tpu.core_type = #tpu.core_type<tc>, window_params = [{transform_indices = @transform_0, window_bounds = array<i64: 128, 64>}, {pipeline_mode = #tpu.pipeline_mode<synchronous>, transform_indices = @transform_1, window_bounds = array<i64: 64, 64>}, {pipeline_mode = #tpu.pipeline_mode<synchronous>, transform_indices = @transform_2, window_bounds = array<i64: 1, 64>}, {pipeline_mode = #tpu.pipeline_mode<synchronous>, transform_indices = @transform_3, window_bounds = array<i64: 64, 128>}, {pipeline_mode = #tpu.pipeline_mode<synchronous>, transform_indices = @transform_4, window_bounds = array<i64: 1, 128>}, {pipeline_mode = #tpu.pipeline_mode<synchronous>, transform_indices = @transform_5, window_bounds = array<i64: 128, 64>}, {pipeline_mode = #tpu.pipeline_mode<synchronous>, transform_indices = @transform_6, window_bounds = array<i64: 1, 64>}, {pipeline_mode = #tpu.pipeline_mode<synchronous>, transform_indices = @transform_7, window_bounds = array<i64: 64, 128>}, {pipeline_mode = #tpu.pipeline_mode<synchronous>, transform_indices = @transform_8, window_bounds = array<i64: 1, 128>}, {transform_indices = @transform_9, window_bounds = array<i64: 128, 128>}]} {
    %c0 = arith.constant 0 : index
    %c0_0 = arith.constant 0 : index
    %0 = vector.load %arg1[%c0, %c0_0] : memref<128x64xbf16, #tpu.memory_space<vmem>>, vector<128x64xbf16>
    %c0_1 = arith.constant 0 : index
    %c0_2 = arith.constant 0 : index
    %1 = vector.load %arg2[%c0_1, %c0_2] : memref<64x64xbf16, #tpu.memory_space<vmem>>, vector<64x64xbf16>
    %cst = arith.constant dense<0.000000e+00> : vector<128x64xf32>
    %2 = tpu.matmul %0, %1, %cst {dimension_numbers = #tpu.dot_dimension_numbers<[1], [0], [0], [1], [0, 0, 1, 1], [], []>} : vector<128x64xbf16>, vector<64x64xbf16>, vector<128x64xf32> -> vector<128x64xf32>
    %c0_3 = arith.constant 0 : index
    %c0_4 = arith.constant 0 : index
    %3 = vector.load %arg3[%c0_3, %c0_4] : memref<1x64xf32, #tpu.memory_space<vmem>>, vector<1x64xf32>
    %4 = vector.broadcast %3 : vector<1x64xf32> to vector<128x64xf32>
    %5 = arith.addf %2, %4 : vector<128x64xf32>
    %cst_5 = arith.constant 0.000000e+00 : f32
    %6 = vector.broadcast %cst_5 : f32 to vector<128x64xf32>
    %7 = arith.maximumf %5, %6 : vector<128x64xf32>
    %8 = arith.truncf %7 : vector<128x64xf32> to vector<128x64xbf16>
    %c0_6 = arith.constant 0 : index
    %c0_7 = arith.constant 0 : index
    %9 = vector.load %arg4[%c0_6, %c0_7] : memref<64x128xbf16, #tpu.memory_space<vmem>>, vector<64x128xbf16>
    %cst_8 = arith.constant dense<0.000000e+00> : vector<128x128xf32>
    %10 = tpu.matmul %8, %9, %cst_8 {dimension_numbers = #tpu.dot_dimension_numbers<[1], [0], [0], [1], [0, 0, 1, 1], [], []>} : vector<128x64xbf16>, vector<64x128xbf16>, vector<128x128xf32> -> vector<128x128xf32>
    %c0_9 = arith.constant 0 : index
    %c0_10 = arith.constant 0 : index
    %11 = vector.load %arg5[%c0_9, %c0_10] : memref<1x128xf32, #tpu.memory_space<vmem>>, vector<1x128xf32>
    %12 = vector.broadcast %11 : vector<1x128xf32> to vector<128x128xf32>
    %13 = arith.addf %10, %12 : vector<128x128xf32>
    %cst_11 = arith.constant 0.000000e+00 : f32
    %14 = vector.broadcast %cst_11 : f32 to vector<128x128xf32>
    %15 = arith.maximumf %13, %14 : vector<128x128xf32>
    %16 = arith.truncf %15 : vector<128x128xf32> to vector<128x128xbf16>
    %c0_12 = arith.constant 0 : index
    %c0_13 = arith.constant 0 : index
    %17 = vector.load %arg6[%c0_12, %c0_13] : memref<128x64xbf16, #tpu.memory_space<vmem>>, vector<128x64xbf16>
    %cst_14 = arith.constant dense<0.000000e+00> : vector<128x64xf32>
    %18 = tpu.matmul %16, %17, %cst_14 {dimension_numbers = #tpu.dot_dimension_numbers<[1], [0], [0], [1], [0, 0, 1, 1], [], []>} : vector<128x128xbf16>, vector<128x64xbf16>, vector<128x64xf32> -> vector<128x64xf32>
    %c0_15 = arith.constant 0 : index
    %c0_16 = arith.constant 0 : index
    %19 = vector.load %arg7[%c0_15, %c0_16] : memref<1x64xf32, #tpu.memory_space<vmem>>, vector<1x64xf32>
    %20 = vector.broadcast %19 : vector<1x64xf32> to vector<128x64xf32>
    %21 = arith.addf %18, %20 : vector<128x64xf32>
    %cst_17 = arith.constant 0.000000e+00 : f32
    %22 = vector.broadcast %cst_17 : f32 to vector<128x64xf32>
    %23 = arith.maximumf %21, %22 : vector<128x64xf32>
    %24 = arith.truncf %23 : vector<128x64xf32> to vector<128x64xbf16>
    %c0_18 = arith.constant 0 : index
    %c0_19 = arith.constant 0 : index
    %25 = vector.load %arg8[%c0_18, %c0_19] : memref<64x128xbf16, #tpu.memory_space<vmem>>, vector<64x128xbf16>
    %cst_20 = arith.constant dense<0.000000e+00> : vector<128x128xf32>
    %26 = tpu.matmul %24, %25, %cst_20 {dimension_numbers = #tpu.dot_dimension_numbers<[1], [0], [0], [1], [0, 0, 1, 1], [], []>} : vector<128x64xbf16>, vector<64x128xbf16>, vector<128x128xf32> -> vector<128x128xf32>
    %c0_21 = arith.constant 0 : index
    %c0_22 = arith.constant 0 : index
    %27 = vector.load %arg9[%c0_21, %c0_22] : memref<1x128xf32, #tpu.memory_space<vmem>>, vector<1x128xf32>
    %28 = vector.broadcast %27 : vector<1x128xf32> to vector<128x128xf32>
    %29 = arith.addf %26, %28 : vector<128x128xf32>
    %c0_23 = arith.constant 0 : index
    %c0_24 = arith.constant 0 : index
    %30 = vector.load %arg10[%c0_23, %c0_24] : memref<128x128xf32, #tpu.memory_space<vmem>>, vector<128x128xf32>
    tpu.vector_store %arg10[%c0_23, %c0_24], %29 {strides = array<i32>} : memref<128x128xf32, #tpu.memory_space<vmem>>, vector<128x128xf32>,
    return
  }
  func.func @transform_0(%arg0: i32) -> (i32, i32) {
    %c0_i32 = arith.constant 0 : i32
    %c0_i32_0 = arith.constant 0 : i32
    return %arg0, %c0_i32 : i32, i32
  }
  func.func @transform_1(%arg0: i32) -> (i32, i32) {
    %c0_i32 = arith.constant 0 : i32
    %c0_i32_0 = arith.constant 0 : i32
    %c0_i32_1 = arith.constant 0 : i32
    return %c0_i32, %c0_i32_0 : i32, i32
  }
  func.func @transform_2(%arg0: i32) -> (i32, i32) {
    %c0_i32 = arith.constant 0 : i32
    %c0_i32_0 = arith.constant 0 : i32
    %c0_i32_1 = arith.constant 0 : i32
    return %c0_i32, %c0_i32_0 : i32, i32
  }
  func.func @transform_3(%arg0: i32) -> (i32, i32) {
    %c0_i32 = arith.constant 0 : i32
    %c0_i32_0 = arith.constant 0 : i32
    %c0_i32_1 = arith.constant 0 : i32
    return %c0_i32, %c0_i32_0 : i32, i32
  }
  func.func @transform_4(%arg0: i32) -> (i32, i32) {
    %c0_i32 = arith.constant 0 : i32
    %c0_i32_0 = arith.constant 0 : i32
    %c0_i32_1 = arith.constant 0 : i32
    return %c0_i32, %c0_i32_0 : i32, i32
  }
  func.func @transform_5(%arg0: i32) -> (i32, i32) {
    %c0_i32 = arith.constant 0 : i32
    %c0_i32_0 = arith.constant 0 : i32
    %c0_i32_1 = arith.constant 0 : i32
    return %c0_i32, %c0_i32_0 : i32, i32
  }
  func.func @transform_6(%arg0: i32) -> (i32, i32) {
    %c0_i32 = arith.constant 0 : i32
    %c0_i32_0 = arith.constant 0 : i32
    %c0_i32_1 = arith.constant 0 : i32
    return %c0_i32, %c0_i32_0 : i32, i32
  }
  func.func @transform_7(%arg0: i32) -> (i32, i32) {
    %c0_i32 = arith.constant 0 : i32
    %c0_i32_0 = arith.constant 0 : i32
    %c0_i32_1 = arith.constant 0 : i32
    return %c0_i32, %c0_i32_0 : i32, i32
  }
  func.func @transform_8(%arg0: i32) -> (i32, i32) {
    %c0_i32 = arith.constant 0 : i32
    %c0_i32_0 = arith.constant 0 : i32
    %c0_i32_1 = arith.constant 0 : i32
    return %c0_i32, %c0_i32_0 : i32, i32
  }
  func.func @transform_9(%arg0: i32) -> (i32, i32) {
    %c0_i32 = arith.constant 0 : i32
    %c0_i32_0 = arith.constant 0 : i32
    return %arg0, %c0_i32 : i32, i32
  }
}

</mosaic_0001>

<bundles_post_ra>
// kernel: mlp_forward.1
= control target key start
LH: loop header
LB: loop body
LE: loop exit
PB: predicated region body
PF: predicated region fallthrough
CT: control target
= control target key end

     0   :  { %s1227_s30 = smov 0   ;;  %s1398_s0 = inlined_call_operand.vmem [shape: bf16[384,64], index: 0, kind: input, shape index: {}]   ;;  %s1399_s1 = inlined_call_operand.vmem [shape: bf16[64,64], index: 1, kind: input, shape index: {}]   ;;  %s1400_s2 = inlined_call_operand.vmem [shape: f32[1,64], index: 2, kind: input, shape index: {}]   ;;  %s1401_s3 = inlined_call_operand.vmem [shape: bf16[64,128], index: 3, kind: input, shape index: {}]   ;;  %s1402_s4 = inlined_call_operand.vmem [shape: f32[1,128], index: 4, kind: input, shape index: {}]   ;;  %s1403_s5 = inlined_call_operand.vmem [shape: bf16[128,64], index: 5, kind: input, shape index: {}]   ;;  %s1404_s6 = inlined_call_operand.vmem [shape: f32[1,64], index: 6, kind: input, shape index: {}]   ;;  %s1405_s7 = inlined_call_operand.vmem [shape: bf16[64,128], index: 7, kind: input, shape index: {}]   ;;  %s1406_s8 = inlined_call_operand.vmem [shape: f32[1,128], index: 8, kind: input, shape index: {}]   ;;  %s1407_s9 = inlined_call_operand.vmem [shape: f32[384,128], index: 9, kind: output, shape index: {}]  }
   0x1 LB: > { %s982_s10 = sadd.s32 4294967295, %s1175_s30   ;;  %p986_p0 = scmp.ge.s32.totalorder %s1175_s30, 1  ;;  %s1175_s30 = sphi %s1227_s30, %s19_s30  }
   0x2   : > { %p288_p1 = scmp.lt.s32.totalorder %s1175_s30, 4 }
   0x4   : > { %p289_p2 = pnand %p986_p0, %p288_p1 }
   0x5   : > { %s987_s13 = sshll.u32 (!%p289_p2), %s982_s10, 4 }
   0x6   : > { %292 = sbr.rel (%p289_p2) target bundleno = 708 (0x2c4), region = 56  ;;  %p325_p3 = scmp.lt.s32.totalorder (!%p289_p2), %s987_s13, 47 }
   0xb   : > { %v1140_v0 = vld [vmem:[%s1399_s1 + $0x18] sm:$0xff]  ;;  %v1139_v1 = vld [vmem:[%s1399_s1 + $0x10] sm:$0xff]  ;;  %s1409_s13 = smov (!%p325_p3, %s987_s13), 47  ;;  %v1138_v2 = vld [vmem:[%s1399_s1 + $0x8] sm:$0xff]  ;;  %vm429_vm0 = vcmask 523264  }
   0xc   : > { %458 = vmatpush.bf16.msra.mxu0 %v1140_v0  ;;  %s988_s18 = sshll.u32 %s1409_s13, 2  ;;  %v1137_v3 = vld [vmem:[%s1399_s1] sm:$0xff]  ;;  %v1144_v10 = vld [vmem:[%s1401_s3 + $0x18] sm:$0xff]  ;;  %v1143_v12 = vld [vmem:[%s1401_s3 + $0x10] sm:$0xff]  ;;  %s990_s24 = sshll.u32 %s1409_s13, 3 }
   0xd   : > { %s328_s23 = scalar_lea.vmem %s1398_s0, %s988_s18  ;;  %591 = vmatpush.bf16.msra.mxu1 %v1144_v10  ;;  %v1142_v13 = vld [vmem:[%s1401_s3 + $0x8] sm:$0xff]  ;;  %v1141_v14 = vld [vmem:[%s1401_s3] sm:$0xff]  ;;  %v1152_v56 = vld [vmem:[%s1403_s5 + $0x38] sm:$0xff]  ;;  %s1377_s29 = scalar_lea.vmem %s1407_s9, %s990_s24 }
   0xe   : > { %v1129_v4 = vld [vmem:[%s328_s23] sm:$0xff]  ;;  %v1130_v5 = vld [vmem:[%s328_s23 + $0x8] sm:$0xff]  ;;  %v1131_v6 = vld [vmem:[%s328_s23 + $0x10] sm:$0xff]  ;;  %728 = vmatpush.bf16.msra.mxu2 %v1152_v56 }
   0xf   : > { %v1132_v7 = vld [vmem:[%s328_s23 + $0x18] sm:$0xff]  ;;  %v1133_v8 = vld [vmem:[%s328_s23 + $0x20] sm:$0xff]  ;;  %v1134_v9 = vld [vmem:[%s328_s23 + $0x28] sm:$0xff] }
  0x10   : > { %459 = vmatpush.bf16.msra.mxu0 %v1139_v1  ;;  %v1135_v11 = vld [vmem:[%s328_s23 + $0x30] sm:$0xff]  ;;  %v1136_v15 = vld [vmem:[%s328_s23 + $0x38] sm:$0xff]  ;;  %v1276_v17 = vld [vmem:[%s1400_s2] ss:$0 sm:$0xff] }
  0x11   : > { %592 = vmatpush.bf16.msra.mxu1 %v1143_v12  ;;  %v1151_v60 = vld [vmem:[%s1403_s5 + $0x30] sm:$0xff]  ;;  %v1150_v62 = vld [vmem:[%s1403_s5 + $0x28] sm:$0xff]  ;;  %v1149_v63 = vld [vmem:[%s1403_s5 + $0x20] sm:$0xff] }
  0x12   : > { %729 = vmatpush.bf16.msra.mxu2 %v1151_v60  ;;  %v1145_v10 = vld [vmem:[%s1403_s5] sm:$0xff] }
  0x14   : > { %460 = vmatpush.bf16.msra.mxu0 %v1138_v2 }
  0x15   : > { %593 = vmatpush.bf16.msra.mxu1 %v1142_v13 }
  0x16   : > { %730 = vmatpush.bf16.msra.mxu2 %v1150_v62 }
  0x18   : > { %461 = vmatpush.bf16.msra.mxu0 %v1137_v3  ;;  %v1148_v3 = vld [vmem:[%s1403_s5 + $0x18] sm:$0xff] }
  0x19   : > { %594 = vmatpush.bf16.msra.mxu1 %v1141_v14 }
  0x1a   : > { %731 = vmatpush.bf16.msra.mxu2 %v1149_v63 }
  0x1b   : > { %1039 = vmatmul.msk.bf16.vlgmr.msra.gmra.mxu0 %vm429_vm0, %v1129_v4 }
  0x1e   : > { %732 = vmatpush.bf16.msra.mxu2 %v1148_v3 }
  0x2b   : > { %1040 = vmatmul.msk.bf16.gmra.mxu0 %vm429_vm0, %v1130_v5 }
  0x3b   : > { %1041 = vmatmul.msk.bf16.gmra.mxu0 %vm429_vm0, %v1131_v6 }
  0x4b   : > { %1042 = vmatmul.msk.bf16.gmra.mxu0 %vm429_vm0, %v1132_v7  ;;  %v1147_v7 = vld [vmem:[%s1403_s5 + $0x10] sm:$0xff] }
  0x4c   : > { %733 = vmatpush.bf16.msra.mxu2 %v1147_v7 }
  0x5b   : > { %1043 = vmatmul.msk.bf16.gmra.mxu0 %vm429_vm0, %v1133_v8 }
  0x6b   : > { %1044 = vmatmul.msk.bf16.gmra.mxu0 %vm429_vm0, %v1134_v9  ;;  %v1146_v9 = vld [vmem:[%s1403_s5 + $0x8] sm:$0xff] }
  0x6c   : > { %734 = vmatpush.bf16.msra.mxu2 %v1146_v9 }
  0x70   : > { %735 = vmatpush.bf16.msra.mxu2 %v1145_v10 }
  0x7b   : > { %1045 = vmatmul.msk.bf16.gmra.mxu0 %vm429_vm0, %v1135_v11 }
  0x8b   : > { %1046 = vmatmul.msk.bf16.gmra.mxu0 %vm429_vm0, %v1136_v15 }
  0x98   : > { %v463_v16 = vpop.f32.mrf.mxu0 }
  0x99   : > { %v464_v18 = vadd.f32 %v1276_v17, %v463_v16 }
  0x9b   : > { %v503_v21 = vmax.f32 %v464_v18, 0.0 }
  0xa0   : > { %v465_v19 = vpop.f32.mrf.mxu0 }
  0xa1   : > { %v466_v20 = vadd.f32 %v1276_v17, %v465_v19  ;;  %v1329_v19 = vld [vmem:[%s1402_s4] ss:$0 sm:$0xff] }
  0xa3   : > { %v504_v22 = vmax.f32 %v466_v20, 0.0 }
  0xa5   : > { %v519_v23 = vpack.c.bf16 %v504_v22, %v503_v21 }
  0xa7   : > { %1063 = vmatmul.msk.bf16.vlgmr.msra.gmra.mxu1 %vm429_vm0, %v519_v23 }
  0xa8   : > { %v468_v24 = vpop.f32.mrf.mxu0 }
  0xa9   : > { %v469_v25 = vadd.f32 %v1276_v17, %v468_v24 }
  0xab   : > { %v505_v28 = vmax.f32 %v469_v25, 0.0 }
  0xb0   : > { %v470_v26 = vpop.f32.mrf.mxu0 }
  0xb1   : > { %v471_v27 = vadd.f32 %v1276_v17, %v470_v26 }
  0xb3   : > { %v506_v29 = vmax.f32 %v471_v27, 0.0 }
  0xb5   : > { %v520_v30 = vpack.c.bf16 %v506_v29, %v505_v28 }
  0xb7   : > { %1064 = vmatmul.msk.bf16.gmra.mxu1 %vm429_vm0, %v520_v30 }
  0xb8   : > { %v473_v31 = vpop.f32.mrf.mxu0 }
  0xb9   : > { %v474_v32 = vadd.f32 %v1276_v17, %v473_v31 }
  0xbb   : > { %v507_v35 = vmax.f32 %v474_v32, 0.0 }
  0xc0   : > { %v475_v33 = vpop.f32.mrf.mxu0 }
  0xc1   : > { %v476_v34 = vadd.f32 %v1276_v17, %v475_v33 }
  0xc3   : > { %v508_v36 = vmax.f32 %v476_v34, 0.0 }
  0xc5   : > { %v521_v37 = vpack.c.bf16 %v508_v36, %v507_v35 }
  0xc7   : > { %1065 = vmatmul.msk.bf16.gmra.mxu1 %vm429_vm0, %v521_v37 }
  0xc8   : > { %v478_v38 = vpop.f32.mrf.mxu0 }
  0xc9   : > { %v479_v39 = vadd.f32 %v1276_v17, %v478_v38 }
  0xcb   : > { %v509_v42 = vmax.f32 %v479_v39, 0.0 }
  0xd0   : > { %v480_v40 = vpop.f32.mrf.mxu0 }
  0xd1   : > { %v481_v41 = vadd.f32 %v1276_v17, %v480_v40 }
  0xd3   : > { %v510_v43 = vmax.f32 %v481_v41, 0.0 }
  0xd5   : > { %v522_v44 = vpack.c.bf16 %v510_v43, %v509_v42 }
  0xd7   : > { %1066 = vmatmul.msk.bf16.gmra.mxu1 %vm429_vm0, %v522_v44 }
  0xd8   : > { %v483_v45 = vpop.f32.mrf.mxu0 }
  0xd9   : > { %v484_v46 = vadd.f32 %v1276_v17, %v483_v45 }
  0xdb   : > { %v511_v49 = vmax.f32 %v484_v46, 0.0 }
  0xe0   : > { %v485_v47 = vpop.f32.mrf.mxu0 }
  0xe1   : > { %v486_v48 = vadd.f32 %v1276_v17, %v485_v47 }
  0xe3   : > { %v512_v50 = vmax.f32 %v486_v48, 0.0 }
  0xe5   : > { %v523_v51 = vpack.c.bf16 %v512_v50, %v511_v49 }
  0xe7   : > { %1067 = vmatmul.msk.bf16.gmra.mxu1 %vm429_vm0, %v523_v51 }
  0xe8   : > { %v488_v52 = vpop.f32.mrf.mxu0 }
  0xe9   : > { %v489_v53 = vadd.f32 %v1276_v17, %v488_v52 }
  0xeb   : > { %v513_v57 = vmax.f32 %v489_v53, 0.0 }
  0xf0   : > { %v490_v54 = vpop.f32.mrf.mxu0 }
  0xf1   : > { %v491_v55 = vadd.f32 %v1276_v17, %v490_v54 }
  0xf3   : > { %v514_v58 = vmax.f32 %v491_v55, 0.0 }
  0xf5   : > { %v524_v59 = vpack.c.bf16 %v514_v58, %v513_v57 }
  0xf7   : > { %1068 = vmatmul.msk.bf16.gmra.mxu1 %vm429_vm0, %v524_v59 }
  0xf8   : > { %v493_v61 = vpop.f32.mrf.mxu0 }
  0xf9   : > { %v494_v0 = vadd.f32 %v1276_v17, %v493_v61 }
  0xfb   : > { %v515_v4 = vmax.f32 %v494_v0, 0.0 }
 0x100   : > { %v495_v1 = vpop.f32.mrf.mxu0 }
 0x101   : > { %v496_v2 = vadd.f32 %v1276_v17, %v495_v1 }
 0x103   : > { %v516_v5 = vmax.f32 %v496_v2, 0.0 }
 0x105   : > { %v525_v6 = vpack.c.bf16 %v516_v5, %v515_v4  ;;  %v1156_v4 = vld [vmem:[%s1405_s7 + $0x18] sm:$0xff]  ;;  %v1155_v5 = vld [vmem:[%s1405_s7 + $0x10] sm:$0xff] }
 0x106   : > { %865 = vmatpush.bf16.msra.mxu3 %v1156_v4 }
 0x107   : > { %1069 = vmatmul.msk.bf16.gmra.mxu1 %vm429_vm0, %v525_v6 }
 0x108   : > { %v498_v8 = vpop.f32.mrf.mxu0 }
 0x109   : > { %v499_v11 = vadd.f32 %v1276_v17, %v498_v8  ;;  %v1154_v8 = vld [vmem:[%s1405_s7 + $0x8] sm:$0xff] }
 0x10a   : > { %866 = vmatpush.bf16.msra.mxu3 %v1155_v5 }
 0x10b   : > { %v517_v14 = vmax.f32 %v499_v11, 0.0 }
 0x10e   : > { %867 = vmatpush.bf16.msra.mxu3 %v1154_v8 }
 0x110   : > { %v500_v12 = vpop.f32.mrf.mxu0 }
 0x111   : > { %v501_v13 = vadd.f32 %v1276_v17, %v500_v12  ;;  %v1153_v12 = vld [vmem:[%s1405_s7] sm:$0xff] }
 0x112   : > { %868 = vmatpush.bf16.msra.mxu3 %v1153_v12 }
 0x113   : > { %v518_v15 = vmax.f32 %v501_v13, 0.0 }
 0x115   : > { %v526_v16 = vpack.c.bf16 %v518_v15, %v517_v14  ;;  %v1167_v15 = vld [vmem:[%s1404_s6] ss:$0 sm:$0xff] }
 0x117   : > { %1070 = vmatmul.msk.bf16.gmra.mxu1 %vm429_vm0, %v526_v16 }
 0x124   : > { %v596_v18 = vpop.f32.mrf.mxu1 }
 0x125   : > { %v597_v20 = vadd.f32 %v1329_v19, %v596_v18 }
 0x127   : > { %v636_v23 = vmax.f32 %v597_v20, 0.0 }
 0x12c   : > { %v598_v21 = vpop.f32.mrf.mxu1 }
 0x12d   : > { %v599_v22 = vadd.f32 %v1329_v19, %v598_v21 }
 0x12f   : > { %v637_v24 = vmax.f32 %v599_v22, 0.0 }
 0x131   : > { %v652_v25 = vpack.c.bf16 %v637_v24, %v636_v23 }
 0x133   : > { %736 = vmatmul.bf16.vlgmr.msra.gmra.mxu2 %v652_v25 }
 0x134   : > { %v601_v17 = vpop.f32.mrf.mxu1 }
 0x135   : > { %v602_v26 = vadd.f32 %v1329_v19, %v601_v17 }
 0x137   : > { %v638_v29 = vmax.f32 %v602_v26, 0.0 }
 0x13c   : > { %v603_v27 = vpop.f32.mrf.mxu1 }
 0x13d   : > { %v604_v28 = vadd.f32 %v1329_v19, %v603_v27 }
 0x13f   : > { %v639_v30 = vmax.f32 %v604_v28, 0.0 }
 0x141   : > { %v653_v31 = vpack.c.bf16 %v639_v30, %v638_v29 }
 0x143   : > { %741 = vmatmul.bf16.gmra.mxu2 %v653_v31 }
 0x144   : > { %v606_v32 = vpop.f32.mrf.mxu1 }
 0x145   : > { %v607_v33 = vadd.f32 %v1329_v19, %v606_v32 }
 0x147   : > { %v640_v36 = vmax.f32 %v607_v33, 0.0 }
 0x14c   : > { %v608_v34 = vpop.f32.mrf.mxu1 }
 0x14d   : > { %v609_v35 = vadd.f32 %v1329_v19, %v608_v34 }
 0x14f   : > { %v641_v37 = vmax.f32 %v609_v35, 0.0 }
 0x151   : > { %v654_v38 = vpack.c.bf16 %v641_v37, %v640_v36 }
 0x153   : > { %746 = vmatmul.bf16.gmra.mxu2 %v654_v38 }
 0x154   : > { %v611_v39 = vpop.f32.mrf.mxu1 }
 0x155   : > { %v612_v40 = vadd.f32 %v1329_v19, %v611_v39 }
 0x157   : > { %v642_v43 = vmax.f32 %v612_v40, 0.0 }
 0x15c   : > { %v613_v41 = vpop.f32.mrf.mxu1 }
 0x15d   : > { %v614_v42 = vadd.f32 %v1329_v19, %v613_v41 }
 0x15f   : > { %v643_v44 = vmax.f32 %v614_v42, 0.0 }
 0x161   : > { %v655_v45 = vpack.c.bf16 %v643_v44, %v642_v43 }
 0x163   : > { %751 = vmatmul.bf16.gmra.mxu2 %v655_v45 }
 0x164   : > { %v616_v46 = vpop.f32.mrf.mxu1 }
 0x165   : > { %v617_v47 = vadd.f32 %v1329_v19, %v616_v46 }
 0x167   : > { %v644_v50 = vmax.f32 %v617_v47, 0.0 }
 0x16c   : > { %v618_v48 = vpop.f32.mrf.mxu1 }
 0x16d   : > { %v619_v49 = vadd.f32 %v1329_v19, %v618_v48 }
 0x16f   : > { %v645_v51 = vmax.f32 %v619_v49, 0.0 }
 0x171   : > { %v656_v52 = vpack.c.bf16 %v645_v51, %v644_v50 }
 0x173   : > { %756 = vmatmul.bf16.gmra.mxu2 %v656_v52 }
 0x174   : > { %v621_v53 = vpop.f32.mrf.mxu1 }
 0x175   : > { %v622_v54 = vadd.f32 %v1329_v19, %v621_v53 }
 0x177   : > { %v646_v57 = vmax.f32 %v622_v54, 0.0 }
 0x17c   : > { %v623_v55 = vpop.f32.mrf.mxu1 }
 0x17d   : > { %v624_v56 = vadd.f32 %v1329_v19, %v623_v55 }
 0x17f   : > { %v647_v58 = vmax.f32 %v624_v56, 0.0 }
 0x181   : > { %v657_v59 = vpack.c.bf16 %v647_v58, %v646_v57 }
 0x183   : > { %761 = vmatmul.bf16.gmra.mxu2 %v657_v59 }
 0x184   : > { %v626_v60 = vpop.f32.mrf.mxu1 }
 0x185   : > { %v627_v61 = vadd.f32 %v1329_v19, %v626_v60 }
 0x187   : > { %v648_v0 = vmax.f32 %v627_v61, 0.0 }
 0x18c   : > { %v628_v62 = vpop.f32.mrf.mxu1 }
 0x18d   : > { %v629_v63 = vadd.f32 %v1329_v19, %v628_v62 }
 0x18f   : > { %v649_v1 = vmax.f32 %v629_v63, 0.0 }
 0x191   : > { %v658_v2 = vpack.c.bf16 %v649_v1, %v648_v0 }
 0x193   : > { %766 = vmatmul.bf16.gmra.mxu2 %v658_v2 }
 0x194   : > { %v631_v3 = vpop.f32.mrf.mxu1 }
 0x195   : > { %v632_v6 = vadd.f32 %v1329_v19, %v631_v3 }
 0x197   : > { %v650_v10 = vmax.f32 %v632_v6, 0.0 }
 0x19c   : > { %v633_v7 = vpop.f32.mrf.mxu1 }
 0x19d   : > { %v634_v9 = vadd.f32 %v1329_v19, %v633_v7  ;;  %v1168_v7 = vld [vmem:[%s1406_s8] ss:$0 sm:$0xff] }
 0x19f   : > { %v651_v11 = vmax.f32 %v634_v9, 0.0 }
 0x1a1   : > { %v659_v13 = vpack.c.bf16 %v651_v11, %v650_v10 }
 0x1a3   : > { %771 = vmatmul.bf16.gmra.mxu2 %v659_v13 }
 0x1b6   : > { %v737_v14 = vpop.f32.mrf.mxu2 }
 0x1b7   : > { %v738_v16 = vadd.f32 %v1167_v15, %v737_v14 }
 0x1b9   : > { %v777_v21 = vmax.f32 %v738_v16, 0.0 }
 0x1be   : > { %v739_v18 = vpop.f32.mrf.mxu2 }
 0x1bf   : > { %v740_v20 = vadd.f32 %v1167_v15, %v739_v18 }
 0x1c1   : > { %v778_v19 = vmax.f32 %v740_v20, 0.0 }
 0x1c3   : > { %v793_v22 = vpack.c.bf16 %v778_v19, %v777_v21 }
 0x1c5   : > { %1119 = vmatmul.msk.bf16.vlgmr.msra.gmra.mxu3 %vm429_vm0, %v793_v22 }
 0x1c6   : > { %v742_v23 = vpop.f32.mrf.mxu2 }
 0x1c7   : > { %v743_v24 = vadd.f32 %v1167_v15, %v742_v23 }
 0x1c9   : > { %v779_v26 = vmax.f32 %v743_v24, 0.0 }
 0x1ce   : > { %v744_v25 = vpop.f32.mrf.mxu2 }
 0x1cf   : > { %v745_v17 = vadd.f32 %v1167_v15, %v744_v25 }
 0x1d1   : > { %v780_v27 = vmax.f32 %v745_v17, 0.0 }
 0x1d3   : > { %v794_v28 = vpack.c.bf16 %v780_v27, %v779_v26 }
 0x1d5   : > { %1120 = vmatmul.msk.bf16.gmra.mxu3 %vm429_vm0, %v794_v28 }
 0x1d6   : > { %v747_v29 = vpop.f32.mrf.mxu2 }
 0x1d7   : > { %v748_v30 = vadd.f32 %v1167_v15, %v747_v29 }
 0x1d9   : > { %v781_v33 = vmax.f32 %v748_v30, 0.0 }
 0x1de   : > { %v749_v31 = vpop.f32.mrf.mxu2 }
 0x1df   : > { %v750_v32 = vadd.f32 %v1167_v15, %v749_v31 }
 0x1e1   : > { %v782_v34 = vmax.f32 %v750_v32, 0.0 }
 0x1e3   : > { %v795_v35 = vpack.c.bf16 %v782_v34, %v781_v33 }
 0x1e5   : > { %1121 = vmatmul.msk.bf16.gmra.mxu3 %vm429_vm0, %v795_v35 }
 0x1e6   : > { %v752_v36 = vpop.f32.mrf.mxu2 }
 0x1e7   : > { %v753_v37 = vadd.f32 %v1167_v15, %v752_v36 }
 0x1e9   : > { %v783_v40 = vmax.f32 %v753_v37, 0.0 }
 0x1ee   : > { %v754_v38 = vpop.f32.mrf.mxu2 }
 0x1ef   : > { %v755_v39 = vadd.f32 %v1167_v15, %v754_v38 }
 0x1f1   : > { %v784_v41 = vmax.f32 %v755_v39, 0.0 }
 0x1f3   : > { %v796_v42 = vpack.c.bf16 %v784_v41, %v783_v40 }
 0x1f5   : > { %1122 = vmatmul.msk.bf16.gmra.mxu3 %vm429_vm0, %v796_v42 }
 0x1f6   : > { %v757_v43 = vpop.f32.mrf.mxu2 }
 0x1f7   : > { %v758_v44 = vadd.f32 %v1167_v15, %v757_v43 }
 0x1f9   : > { %v785_v47 = vmax.f32 %v758_v44, 0.0 }
 0x1fe   : > { %v759_v45 = vpop.f32.mrf.mxu2 }
 0x1ff   : > { %v760_v46 = vadd.f32 %v1167_v15, %v759_v45 }
 0x201   : > { %v786_v48 = vmax.f32 %v760_v46, 0.0 }
 0x203   : > { %v797_v49 = vpack.c.bf16 %v786_v48, %v785_v47 }
 0x205   : > { %1123 = vmatmul.msk.bf16.gmra.mxu3 %vm429_vm0, %v797_v49 }
 0x206   : > { %v762_v50 = vpop.f32.mrf.mxu2 }
 0x207   : > { %v763_v51 = vadd.f32 %v1167_v15, %v762_v50 }
 0x209   : > { %v787_v54 = vmax.f32 %v763_v51, 0.0 }
 0x20e   : > { %v764_v52 = vpop.f32.mrf.mxu2 }
 0x20f   : > { %v765_v53 = vadd.f32 %v1167_v15, %v764_v52 }
 0x211   : > { %v788_v55 = vmax.f32 %v765_v53, 0.0 }
 0x213   : > { %v798_v56 = vpack.c.bf16 %v788_v55, %v787_v54 }
 0x215   : > { %1124 = vmatmul.msk.bf16.gmra.mxu3 %vm429_vm0, %v798_v56 }
 0x216   : > { %v767_v57 = vpop.f32.mrf.mxu2 }
 0x217   : > { %v768_v58 = vadd.f32 %v1167_v15, %v767_v57 }
 0x219   : > { %v789_v61 = vmax.f32 %v768_v58, 0.0 }
 0x21e   : > { %v769_v59 = vpop.f32.mrf.mxu2 }
 0x21f   : > { %v770_v60 = vadd.f32 %v1167_v15, %v769_v59 }
 0x221   : > { %v790_v62 = vmax.f32 %v770_v60, 0.0 }
 0x223   : > { %v799_v63 = vpack.c.bf16 %v790_v62, %v789_v61 }
 0x225   : > { %1125 = vmatmul.msk.bf16.gmra.mxu3 %vm429_vm0, %v799_v63 }
 0x226   : > { %v772_v0 = vpop.f32.mrf.mxu2 }
 0x227   : > { %v773_v1 = vadd.f32 %v1167_v15, %v772_v0 }
 0x229   : > { %v791_v4 = vmax.f32 %v773_v1, 0.0 }
 0x22e   : > { %v774_v2 = vpop.f32.mrf.mxu2 }
 0x22f   : > { %v775_v3 = vadd.f32 %v1167_v15, %v774_v2 }
 0x231   : > { %v792_v5 = vmax.f32 %v775_v3, 0.0 }
 0x233   : > { %v800_v6 = vpack.c.bf16 %v792_v5, %v791_v4 }
 0x235   : > { %1126 = vmatmul.msk.bf16.gmra.mxu3 %vm429_vm0, %v800_v6 }
 0x248   : > { %v870_v8 = vpop.f32.mrf.mxu3 }
 0x249   : > { %v871_v9 = vadd.f32 %v1168_v7, %v870_v8 }
 0x24b   : > { %910 = vst [vmem:[%s1377_s29] sm:$0xff] %v871_v9 }
 0x250   : > { %v872_v10 = vpop.f32.mrf.mxu3 }
 0x251   : > { %v873_v11 = vadd.f32 %v1168_v7, %v872_v10 }
 0x253   : > { %911 = vst [vmem:[%s1377_s29 + $0x8] sm:$0xff] %v873_v11 }
 0x258   : > { %v875_v12 = vpop.f32.mrf.mxu3 }
 0x259   : > { %v876_v13 = vadd.f32 %v1168_v7, %v875_v12 }
 0x25b   : > { %912 = vst [vmem:[%s1377_s29 + $0x10] sm:$0xff] %v876_v13 }
 0x260   : > { %v877_v14 = vpop.f32.mrf.mxu3 }
 0x261   : > { %v878_v15 = vadd.f32 %v1168_v7, %v877_v14 }
 0x263   : > { %913 = vst [vmem:[%s1377_s29 + $0x18] sm:$0xff] %v878_v15 }
 0x268   : > { %v880_v16 = vpop.f32.mrf.mxu3 }
 0x269   : > { %v881_v18 = vadd.f32 %v1168_v7, %v880_v16 }
 0x26b   : > { %914 = vst [vmem:[%s1377_s29 + $0x20] sm:$0xff] %v881_v18 }
 0x270   : > { %v882_v20 = vpop.f32.mrf.mxu3 }
 0x271   : > { %v883_v21 = vadd.f32 %v1168_v7, %v882_v20 }
 0x273   : > { %915 = vst [vmem:[%s1377_s29 + $0x28] sm:$0xff] %v883_v21 }
 0x278   : > { %v885_v19 = vpop.f32.mrf.mxu3 }
 0x279   : > { %v886_v22 = vadd.f32 %v1168_v7, %v885_v19 }
 0x27b   : > { %916 = vst [vmem:[%s1377_s29 + $0x30] sm:$0xff] %v886_v22 }
 0x280   : > { %v887_v23 = vpop.f32.mrf.mxu3 }
 0x281   : > { %v888_v24 = vadd.f32 %v1168_v7, %v887_v23 }
 0x283   : > { %917 = vst [vmem:[%s1377_s29 + $0x38] sm:$0xff] %v888_v24 }
 0x288   : > { %v890_v25 = vpop.f32.mrf.mxu3 }
 0x289   : > { %v891_v17 = vadd.f32 %v1168_v7, %v890_v25 }
 0x28b   : > { %918 = vst [vmem:[%s1377_s29 + $0x40] sm:$0xff] %v891_v17 }
 0x290   : > { %v892_v26 = vpop.f32.mrf.mxu3 }
 0x291   : > { %v893_v27 = vadd.f32 %v1168_v7, %v892_v26 }
 0x293   : > { %919 = vst [vmem:[%s1377_s29 + $0x48] sm:$0xff] %v893_v27 }
 0x298   : > { %v895_v28 = vpop.f32.mrf.mxu3 }
 0x299   : > { %v896_v29 = vadd.f32 %v1168_v7, %v895_v28 }
 0x29b   : > { %920 = vst [vmem:[%s1377_s29 + $0x50] sm:$0xff] %v896_v29 }
 0x2a0   : > { %v897_v30 = vpop.f32.mrf.mxu3 }
 0x2a1   : > { %v898_v31 = vadd.f32 %v1168_v7, %v897_v30 }
 0x2a3   : > { %921 = vst [vmem:[%s1377_s29 + $0x58] sm:$0xff] %v898_v31 }
 0x2a8   : > { %v900_v32 = vpop.f32.mrf.mxu3 }
 0x2a9   : > { %v901_v33 = vadd.f32 %v1168_v7, %v900_v32 }
 0x2ab   : > { %922 = vst [vmem:[%s1377_s29 + $0x60] sm:$0xff] %v901_v33 }
 0x2b0   : > { %v902_v34 = vpop.f32.mrf.mxu3 }
 0x2b1   : > { %v903_v35 = vadd.f32 %v1168_v7, %v902_v34 }
 0x2b3   : > { %923 = vst [vmem:[%s1377_s29 + $0x68] sm:$0xff] %v903_v35 }
 0x2b8   : > { %v905_v36 = vpop.f32.mrf.mxu3 }
 0x2b9   : > { %v906_v37 = vadd.f32 %v1168_v7, %v905_v36 }
 0x2bb   : > { %924 = vst [vmem:[%s1377_s29 + $0x70] sm:$0xff] %v906_v37 }
 0x2c0   : > { %v907_v38 = vpop.f32.mrf.mxu3 }
 0x2c1   : > { %v908_v39 = vadd.f32 %v1168_v7, %v907_v38 }
 0x2c3   : > { %925 = vst [vmem:[%s1377_s29 + $0x78] sm:$0xff] %v908_v39 }
 0x2c4 PF: > { %s19_s30 = sadd.s32 1, %s1175_s30  }
 0x2c5   : > { %p16_p4 = scmp.ge.s32.totalorder %s19_s30, 5  }
 0x2c7   :  { %18 = sbr.rel (!%p16_p4) target bundleno = 1 (0x1), region = 86 }

</bundles_post_ra>
